<compile_context>
chip_gen: v5e
topology: v5e:2x2
jax: 0.10.0
libtpu: 0.0.40
codegen_flags: <defaults>
</compile_context>

<pallas_src>
import functools

import jax
import jax.numpy as jnp
from jax import lax
from jax.experimental import pallas as pl
from jax.experimental.pallas import tpu as pltpu


def _qfunc_loss_kernel(action_ref, drw_ref, q_ref, dq_ref, tq_ref,
                       td_ref, loss_ref, *, gamma, batch, block_rows,
                       mask_lanes):
    tb, num_act = q_ref.shape

    # Per-sample scalars arrive lane-dense (rows of length TB) -- no transposes.
    action = action_ref[...]                                   # (1, TB) int32
    drw = drw_ref[...]                                         # (3, TB) f32
    done = drw[0:1, :]
    reward = drw[1:2, :]
    weights = drw[2:3, :]

    # Densify lanes once: (TB, A) -> (A, TB) f32.  Every subsequent vector op
    # touches 128 distinct samples per vreg and every per-sample result is a
    # lane-dense (1, TB) row.
    q_t = jnp.transpose(q_ref[...].astype(jnp.float32))        # (A, TB)
    dq_t = jnp.transpose(dq_ref[...].astype(jnp.float32))      # (A, TB)
    tq_t = jnp.transpose(tq_ref[...].astype(jnp.float32))      # (A, TB)

    row = lax.broadcasted_iota(jnp.int32, (num_act, tb), 0)    # action id / row

    # --- q.gather(-1, action) ---
    q_sampled = jnp.sum(jnp.where(row == action, q_t, 0.0),
                        axis=0, keepdims=True)                 # (1, TB)

    # --- best next action from double_q (argmax, first max wins) ---
    max_dq = jnp.max(dq_t, axis=0, keepdims=True)              # (1, TB)
    best_idx = jnp.min(jnp.where(dq_t == max_dq, row, num_act),
                       axis=0, keepdims=True)                  # (1, TB) int32

    # --- gather target_q at the best next action ---
    best_next_q = jnp.sum(jnp.where(row == best_idx, tq_t, 0.0),
                          axis=0, keepdims=True)               # (1, TB)

    # --- TD target / error, SmoothL1 (beta=1), importance weights ---
    q_update = reward + gamma * best_next_q * (1.0 - done)
    td = q_sampled - q_update                                  # (1, TB)
    abs_td = jnp.abs(td)
    losses = jnp.where(abs_td < 1.0, 0.5 * td * td, abs_td - 0.5)
    wl = weights * losses                                      # (1, TB)

    if mask_lanes:
        # Ragged last block: lanes >= batch carry garbage (possibly Inf/NaN).
        # Select on the FINAL value so NaN can never leak into the sum; the
        # corresponding td lanes are dropped by Pallas at writeback.
        lane = lax.broadcasted_iota(jnp.int32, (1, tb), 1)
        valid = (pl.program_id(0) * block_rows + lane) < batch
        wl = jnp.where(valid, wl, 0.0)

    td_ref[...] = td                                           # lane-dense
    loss_ref[...] = jnp.reshape(jnp.sum(wl), (1, 1, 1))


def _vmem_limit_bytes():
    cap = 64 * 1024 * 1024                # conservative default (v7x physical)
    try:
        info = pltpu.get_tpu_info()
        cap = int(getattr(info, "vmem_capacity_bytes", cap))
    except Exception:
        pass
    # <= ~48 MiB on v7x (64 MiB physical), up to 96 MiB on v5e/v6e (128 MiB).
    return max(32 * 1024 * 1024, min(cap * 3 // 4, 96 * 1024 * 1024))


def qfunc_loss(q, action, double_q, target_q, done, reward, weights, *,
               gamma: float, block_rows=None):
    """Pallas implementation of QFuncLoss.forward.

    q, double_q, target_q : [B, A]
    action                : [B] integer
    done, reward, weights : [B] float
    Returns (td_error [B] float32, loss scalar float32).
    """
    B, A = q.shape
    in_dtype = jnp.dtype(q.dtype)
    lanes = pl.cdiv(A, 128) * 128        # lane-padded width of a (tb, A) tile
    vmem_limit = _vmem_limit_bytes()

    if block_rows is None:
        # 3 inputs x 2 pipeline buffers of (tb, lanes) tiles ~= 1/3 of the
        # scoped VMEM limit; cap at 8192 rows.
        budget = vmem_limit // 3
        tb = budget // (6 * lanes * in_dtype.itemsize)
        tb = max(128, min(8192, (tb // 128) * 128))
    else:
        tb = block_rows

    if B <= tb:
        tb = B                            # single full-size block
    else:
        if tb % 128 != 0:
            raise ValueError("block_rows must be a multiple of 128 when the "
                             "batch dimension is tiled")
        # Keep >= 2 grid steps so the 'parallel' batch axis can shard across
        # both TensorCores on v7x.
        tb = min(tb, max(128, pl.cdiv(pl.cdiv(B, 2), 128) * 128))
    grid = pl.cdiv(B, tb)
    mask_lanes = (B % tb) != 0

    # Lane-dense per-sample scalars (tiny copies: B ints + 3B floats).
    action_row = action.reshape(1, B).astype(jnp.int32)        # exact int path
    drw = jnp.stack([done.astype(jnp.float32),
                     reward.astype(jnp.float32),
                     weights.astype(jnp.float32)], axis=0)     # (3, B)

    cost = pl.CostEstimate(
        flops=10 * B * A + 12 * B,
        transcendentals=0,
        bytes_accessed=(3 * B * A * in_dtype.itemsize
                        + B * 4 + 3 * B * 4 + B * 4 + grid * 4),
    )

    td_row, partial = pl.pallas_call(
        functools.partial(_qfunc_loss_kernel, gamma=float(gamma), batch=B,
                          block_rows=tb, mask_lanes=mask_lanes),
        grid=(grid,),
        in_specs=[
            pl.BlockSpec((1, tb), lambda i: (0, i)),       # action (lane-dense)
            pl.BlockSpec((3, tb), lambda i: (0, i)),       # done/reward/weights
            pl.BlockSpec((tb, A), lambda i: (i, 0)),       # q
            pl.BlockSpec((tb, A), lambda i: (i, 0)),       # double_q
            pl.BlockSpec((tb, A), lambda i: (i, 0)),       # target_q
        ],
        out_specs=(
            pl.BlockSpec((1, tb), lambda i: (0, i)),       # td (lane-dense)
            pl.BlockSpec((1, 1, 1), lambda i: (i, 0, 0)),  # per-block loss sums
        ),
        out_shape=(
            jax.ShapeDtypeStruct((1, B), jnp.float32),
            jax.ShapeDtypeStruct((grid, 1, 1), jnp.float32),
        ),
        compiler_params=pltpu.CompilerParams(
            dimension_semantics=("parallel",),
            vmem_limit_bytes=vmem_limit,
        ),
        cost_estimate=cost,
    )(action_row, drw, q, double_q, target_q)

    td = td_row.reshape(B)
    loss = jnp.sum(partial) / B
    return td, loss


def _reference(q, action, double_q, target_q, done, reward, weights, gamma):
    # Pure-JAX reference mirroring the PyTorch module.
    b = jnp.arange(q.shape[0])
    q_sampled = q[b, action]
    best_next = jnp.argmax(double_q, axis=-1)
    best_next_q = target_q[b, best_next]
    q_update = reward + gamma * best_next_q * (1.0 - done)
    td = q_sampled - q_update
    abs_td = jnp.abs(td)
    losses = jnp.where(abs_td < 1.0, 0.5 * td * td, abs_td - 0.5)
    loss = jnp.mean(weights * losses)
    return td, loss


def _make_inputs(key, B, A):
    k = jax.random.split(key, 7)
    q = jax.random.normal(k[0], (B, A), jnp.float32)
    double_q = jax.random.normal(k[1], (B, A), jnp.float32)
    target_q = jax.random.normal(k[2], (B, A), jnp.float32)
    action = jax.random.randint(k[3], (B,), 0, A, jnp.int32)
    done = jax.random.bernoulli(k[4], 0.2, (B,)).astype(jnp.float32)
    reward = jax.random.normal(k[5], (B,), jnp.float32)
    weights = jax.random.uniform(k[6], (B,), jnp.float32, 0.5, 1.5)
    return q, action, double_q, target_q, done, reward, weights


if __name__ == "__main__":
    gamma = 0.99
    key0, key1 = jax.random.split(jax.random.PRNGKey(0))

    # Small single-block case (B=8, actions=16).
    args = _make_inputs(key0, 8, 16)
    td, loss = qfunc_loss(*args, gamma=gamma)
    jax.block_until_ready((td, loss))
    td_ref, loss_ref = _reference(*args, gamma)
    assert jnp.allclose(td, td_ref, atol=1e-5), (td, td_ref)
    assert jnp.allclose(loss, loss_ref, atol=1e-5), (loss, loss_ref)

    # Multi-block case with a ragged last block (exercises the batch grid,
    # parallel partial-loss reduction and the lane mask).
    args2 = _make_inputs(key1, 300, 8)
    td2, loss2 = qfunc_loss(*args2, gamma=gamma, block_rows=128)
    jax.block_until_ready((td2, loss2))
    td2_ref, loss2_ref = _reference(*args2, gamma)
    assert jnp.allclose(td2, td2_ref, atol=1e-5), (td2, td2_ref)
    assert jnp.allclose(loss2, loss2_ref, atol=1e-5), (loss2, loss2_ref)

    print("KERNEL_OK")
</pallas_src>

<mosaic_0001>
module attributes {stable_mosaic.version = 11 : i64} {
  func.func @_qfunc_loss_kernel(%arg0: i32, %arg1: memref<1x8xi32, #tpu.memory_space<vmem>>, %arg2: memref<3x8xf32, #tpu.memory_space<vmem>>, %arg3: memref<8x16xf32, #tpu.memory_space<vmem>>, %arg4: memref<8x16xf32, #tpu.memory_space<vmem>>, %arg5: memref<8x16xf32, #tpu.memory_space<vmem>>, %arg6: memref<1x8xf32, #tpu.memory_space<vmem>>, %arg7: memref<1x1x1xf32, #tpu.memory_space<vmem>>) attributes {dimension_semantics = [#tpu.dimension_semantics<parallel>], iteration_bounds = array<i64: 1>, scalar_prefetch = 0 : i64, scratch_operands = 0 : i64, tpu.core_type = #tpu.core_type<tc>, window_params = [{transform_indices = @transform_0, window_bounds = array<i64: 1, 8>}, {transform_indices = @transform_1, window_bounds = array<i64: 3, 8>}, {transform_indices = @transform_2, window_bounds = array<i64: 8, 16>}, {transform_indices = @transform_3, window_bounds = array<i64: 8, 16>}, {transform_indices = @transform_4, window_bounds = array<i64: 8, 16>}, {transform_indices = @transform_5, window_bounds = array<i64: 1, 8>}, {transform_indices = @transform_6, window_bounds = array<i64: 1, 1, 1>}]} {
    %c0 = arith.constant 0 : index
    %c0_0 = arith.constant 0 : index
    %0 = vector.load %arg1[%c0, %c0_0] : memref<1x8xi32, #tpu.memory_space<vmem>>, vector<1x8xi32>
    %c0_1 = arith.constant 0 : index
    %c0_2 = arith.constant 0 : index
    %1 = vector.load %arg2[%c0_1, %c0_2] : memref<3x8xf32, #tpu.memory_space<vmem>>, vector<3x8xf32>
    %2 = vector.extract_strided_slice %1 {offsets = [0, 0], sizes = [1, 8], strides = [1, 1]} : vector<3x8xf32> to vector<1x8xf32>
    %3 = vector.extract_strided_slice %1 {offsets = [1, 0], sizes = [1, 8], strides = [1, 1]} : vector<3x8xf32> to vector<1x8xf32>
    %4 = vector.extract_strided_slice %1 {offsets = [2, 0], sizes = [1, 8], strides = [1, 1]} : vector<3x8xf32> to vector<1x8xf32>
    %c0_3 = arith.constant 0 : index
    %c0_4 = arith.constant 0 : index
    %5 = vector.load %arg3[%c0_3, %c0_4] : memref<8x16xf32, #tpu.memory_space<vmem>>, vector<8x16xf32>
    %6 = tpu.transpose %5, [1, 0] : vector<8x16xf32> -> vector<16x8xf32>
    %c0_5 = arith.constant 0 : index
    %c0_6 = arith.constant 0 : index
    %7 = vector.load %arg4[%c0_5, %c0_6] : memref<8x16xf32, #tpu.memory_space<vmem>>, vector<8x16xf32>
    %8 = tpu.transpose %7, [1, 0] : vector<8x16xf32> -> vector<16x8xf32>
    %c0_7 = arith.constant 0 : index
    %c0_8 = arith.constant 0 : index
    %9 = vector.load %arg5[%c0_7, %c0_8] : memref<8x16xf32, #tpu.memory_space<vmem>>, vector<8x16xf32>
    %10 = tpu.transpose %9, [1, 0] : vector<8x16xf32> -> vector<16x8xf32>
    %11 = tpu.iota {dimensions = array<i32: 0>} : vector<16x8xi32>
    %12 = vector.broadcast %0 : vector<1x8xi32> to vector<16x8xi32>
    %13 = arith.cmpi eq, %11, %12 : vector<16x8xi32>
    %cst = arith.constant 0.000000e+00 : f32
    %14 = vector.broadcast %cst : f32 to vector<16x8xf32>
    %15 = arith.select %13, %6, %14 : vector<16x8xi1>, vector<16x8xf32>
    %cst_9 = arith.constant dense<0.000000e+00> : vector<8xf32>
    %16 = vector.multi_reduction <add>, %15, %cst_9 [0] : vector<16x8xf32> to vector<8xf32>
    %17 = vector.shape_cast %16 : vector<8xf32> to vector<1x8xf32>
    %cst_10 = arith.constant dense<0xFF800000> : vector<8xf32>
    %18 = vector.multi_reduction <maximumf>, %8, %cst_10 [0] : vector<16x8xf32> to vector<8xf32>
    %19 = vector.shape_cast %18 : vector<8xf32> to vector<1x8xf32>
    %20 = vector.broadcast %19 : vector<1x8xf32> to vector<16x8xf32>
    %21 = arith.cmpf oeq, %8, %20 : vector<16x8xf32>
    %c16_i32 = arith.constant 16 : i32
    %22 = vector.broadcast %c16_i32 : i32 to vector<16x8xi32>
    %23 = arith.select %21, %11, %22 : vector<16x8xi1>, vector<16x8xi32>
    %cst_11 = arith.constant dense<2147483647> : vector<8xi32>
    %24 = vector.multi_reduction <minsi>, %23, %cst_11 [0] : vector<16x8xi32> to vector<8xi32>
    %25 = vector.shape_cast %24 : vector<8xi32> to vector<1x8xi32>
    %26 = vector.broadcast %25 : vector<1x8xi32> to vector<16x8xi32>
    %27 = arith.cmpi eq, %11, %26 : vector<16x8xi32>
    %cst_12 = arith.constant 0.000000e+00 : f32
    %28 = vector.broadcast %cst_12 : f32 to vector<16x8xf32>
    %29 = arith.select %27, %10, %28 : vector<16x8xi1>, vector<16x8xf32>
    %cst_13 = arith.constant dense<0.000000e+00> : vector<8xf32>
    %30 = vector.multi_reduction <add>, %29, %cst_13 [0] : vector<16x8xf32> to vector<8xf32>
    %31 = vector.shape_cast %30 : vector<8xf32> to vector<1x8xf32>
    %cst_14 = arith.constant 9.900000e-01 : f32
    %32 = vector.broadcast %cst_14 : f32 to vector<1x8xf32>
    %33 = arith.mulf %32, %31 : vector<1x8xf32>
    %cst_15 = arith.constant 1.000000e+00 : f32
    %34 = vector.broadcast %cst_15 : f32 to vector<1x8xf32>
    %35 = arith.subf %34, %2 : vector<1x8xf32>
    %36 = arith.mulf %33, %35 : vector<1x8xf32>
    %37 = arith.addf %3, %36 : vector<1x8xf32>
    %38 = arith.subf %17, %37 : vector<1x8xf32>
    %39 = math.absf %38 : vector<1x8xf32>
    %cst_16 = arith.constant 1.000000e+00 : f32
    %40 = vector.broadcast %cst_16 : f32 to vector<1x8xf32>
    %41 = arith.cmpf olt, %39, %40 : vector<1x8xf32>
    %cst_17 = arith.constant 5.000000e-01 : f32
    %42 = vector.broadcast %cst_17 : f32 to vector<1x8xf32>
    %43 = arith.mulf %42, %38 : vector<1x8xf32>
    %44 = arith.mulf %43, %38 : vector<1x8xf32>
    %cst_18 = arith.constant 5.000000e-01 : f32
    %45 = vector.broadcast %cst_18 : f32 to vector<1x8xf32>
    %46 = arith.subf %39, %45 : vector<1x8xf32>
    %47 = arith.select %41, %44, %46 : vector<1x8xi1>, vector<1x8xf32>
    %48 = arith.mulf %4, %47 : vector<1x8xf32>
    %c0_19 = arith.constant 0 : index
    %c0_20 = arith.constant 0 : index
    %49 = vector.load %arg6[%c0_19, %c0_20] : memref<1x8xf32, #tpu.memory_space<vmem>>, vector<1x8xf32>
    tpu.vector_store %arg6[%c0_19, %c0_20], %38 {strides = array<i32>} : memref<1x8xf32, #tpu.memory_space<vmem>>, vector<1x8xf32>,
    %50 = vector.shape_cast %48 : vector<1x8xf32> to vector<1x1x8xf32>
    %cst_21 = arith.constant dense<0.000000e+00> : vector<1xf32>
    %51 = vector.multi_reduction <add>, %50, %cst_21 [1, 2] : vector<1x1x8xf32> to vector<1xf32>
    %52 = vector.shape_cast %51 : vector<1xf32> to vector<1x1x1xf32>
    %53 = vector.extract %52[0, 0, 0] : f32 from vector<1x1x1xf32>
    %54 = vector.broadcast %53 : f32 to vector<1x1x1xf32>
    %c0_22 = arith.constant 0 : index
    %c0_23 = arith.constant 0 : index
    %c0_24 = arith.constant 0 : index
    %55 = vector.load %arg7[%c0_22, %c0_23, %c0_24] : memref<1x1x1xf32, #tpu.memory_space<vmem>>, vector<1x1x1xf32>
    tpu.vector_store %arg7[%c0_22, %c0_23, %c0_24], %54 {strides = array<i32>} : memref<1x1x1xf32, #tpu.memory_space<vmem>>, vector<1x1x1xf32>,
    return
  }
  func.func @transform_0(%arg0: i32) -> (i32, i32) {
    %c0_i32 = arith.constant 0 : i32
    %c0_i32_0 = arith.constant 0 : i32
    return %c0_i32, %arg0 : i32, i32
  }
  func.func @transform_1(%arg0: i32) -> (i32, i32) {
    %c0_i32 = arith.constant 0 : i32
    %c0_i32_0 = arith.constant 0 : i32
    return %c0_i32, %arg0 : i32, i32
  }
  func.func @transform_2(%arg0: i32) -> (i32, i32) {
    %c0_i32 = arith.constant 0 : i32
    %c0_i32_0 = arith.constant 0 : i32
    return %arg0, %c0_i32 : i32, i32
  }
  func.func @transform_3(%arg0: i32) -> (i32, i32) {
    %c0_i32 = arith.constant 0 : i32
    %c0_i32_0 = arith.constant 0 : i32
    return %arg0, %c0_i32 : i32, i32
  }
  func.func @transform_4(%arg0: i32) -> (i32, i32) {
    %c0_i32 = arith.constant 0 : i32
    %c0_i32_0 = arith.constant 0 : i32
    return %arg0, %c0_i32 : i32, i32
  }
  func.func @transform_5(%arg0: i32) -> (i32, i32) {
    %c0_i32 = arith.constant 0 : i32
    %c0_i32_0 = arith.constant 0 : i32
    return %c0_i32, %arg0 : i32, i32
  }
  func.func @transform_6(%arg0: i32) -> (i32, i32, i32) {
    %c0_i32 = arith.constant 0 : i32
    %c0_i32_0 = arith.constant 0 : i32
    %c0_i32_1 = arith.constant 0 : i32
    return %arg0, %c0_i32, %c0_i32_0 : i32, i32, i32
  }
}

</mosaic_0001>

<bundles_post_ra>
// kernel: tpu_custom_call.1
= control target key start
LH: loop header
LB: loop body
LE: loop exit
PB: predicated region body
PF: predicated region fallthrough
CT: control target
= control target key end

     0   :  { %12 = vsyncpa [#allocation3], 0  ;;  %s583_s0 = inlined_call_operand.hbm [shape: s32[1,8], index: 0, kind: input, shape index: {}]   ;;  %s584_s1 = inlined_call_operand.hbm [shape: f32[3,8], index: 1, kind: input, shape index: {}]   ;;  %s585_s2 = inlined_call_operand.hbm [shape: f32[8,16], index: 2, kind: input, shape index: {}]   ;;  %s586_s3 = inlined_call_operand.hbm [shape: f32[8,16], index: 3, kind: input, shape index: {}]   ;;  %s587_s4 = inlined_call_operand.hbm [shape: f32[8,16], index: 4, kind: input, shape index: {}]   ;;  %s588_s5 = inlined_call_operand.hbm [shape: f32[1,8], index: 5, kind: output, shape index: {0}]   ;;  %s589_s6 = inlined_call_operand.hbm [shape: f32[1,1,1], index: 6, kind: output, shape index: {1}]  }
   0x1   :  { %13 = vsyncpa [#allocation6], 0 }
   0x2   :  { %14 = vsyncpa [#allocation9], 0 }
   0x3   :  { %15 = vsyncpa [#allocation4], 0  ;;  %s33_s23 = sshll.u32 %s584_s1, 4  ;;  %s34_s23 = int_to_ptr.hbm [resolvable:$true] %s33_s23 }
   0x4   :  { %16 = vsyncpa [#allocation13], 0  ;;  %s512_s24 = smov [#allocation5]   ;;  %s55_s28 = sshll.u32 %s586_s3, 4  ;;  %s56_s28 = int_to_ptr.hbm [resolvable:$true] %s55_s28 }
   0x5   :  { %s35_s25 = sshll.u32 %s512_s24, 4  ;;  %s513_s29 = smov [#allocation8]   ;;  %s36_s25 = int_to_ptr.vmem [resolvable:$true] %s35_s25 }
   0x6   :  { %38 = dma.hbm_to_vmem [thread:$0]  %s34_s23, 64, %s36_s25, [#allocation6]  }
   0x7   :  { %s57_s30 = sshll.u32 %s513_s29, 4  ;;  %s22_s9 = sshll.u32 %s583_s0, 4  ;;  %s58_s30 = int_to_ptr.vmem [resolvable:$true] %s57_s30  ;;  %s23_s9 = int_to_ptr.hbm [resolvable:$true] %s22_s9 }
   0x8   :  { %60 = dma.hbm_to_vmem [thread:$0]  %s56_s28, 128, %s58_s30, [#allocation9]  }
   0x9   :  { %s44_s11 = sshll.u32 %s585_s2, 4  ;;  %s514_s12 = smov [#allocation2]   ;;  %s45_s11 = int_to_ptr.hbm [resolvable:$true] %s44_s11 }
   0xa   :  { %s24_s13 = sshll.u32 %s514_s12, 4  ;;  %s515_s3 = smov [#allocation7]   ;;  %s25_s13 = int_to_ptr.vmem [resolvable:$true] %s24_s13 }
   0xb   :  { %27 = dma.hbm_to_vmem [thread:$0]  %s23_s9, 16, %s25_s13, [#allocation3]  }
   0xc   :  { %s46_s14 = sshll.u32 %s515_s3, 4  ;;  %s66_s17 = sshll.u32 %s587_s4, 4  ;;  %s47_s14 = int_to_ptr.vmem [resolvable:$true] %s46_s14  ;;  %s67_s17 = int_to_ptr.hbm [resolvable:$true] %s66_s17 }
   0xd   :  { %49 = dma.hbm_to_vmem [thread:$0]  %s45_s11, 128, %s47_s14, [#allocation6]  }
   0xe   :  { %s516_s0 = smov [#allocation10]  }
   0xf   :  { %s68_s18 = sshll.u32 %s516_s0, 4  ;;  %s69_s18 = int_to_ptr.vmem [resolvable:$true] %s68_s18 }
  0x10   :  { %71 = dma.hbm_to_vmem [thread:$0]  %s67_s17, 128, %s69_s18, [#allocation9]  }
  0x11   :  { %502 = dma.done.wait [#allocation3], 16  }
  0x12   :  { %503 = vsyncadd [#allocation3], 4294967280 }
  0x13   :  { %504 = dma.done.wait [#allocation6], 192  }
  0x14   :  { %505 = vsyncadd [#allocation6], 4294967104 }
  0x15   :  { %506 = dma.done.wait [#allocation9], 256  }
  0x16   :  { %507 = vsyncadd [#allocation9], 4294967040  ;;  %v127_v0 = vld [vmem:[#allocation8] sm:$0xff]  ;;  %v94_v1 = vld [vmem:[#allocation7] sm:$0xff]  ;;  %vm201_vm0 = vcmask 64512   ;;  %v193_v9 = vlaneseq  ;;  %vm268_vm11 = vcmask 58369  }
  0x17   :  { %128 = vxpose.xlu0.b32.start.end [1/1] (short) (narrow) %v127_v0, 16  ;;  %95 = vxpose.xlu1.b32.start.end [1/1] (short) (narrow) %v94_v1, 16  ;;  %v160_v2 = vld [vmem:[#allocation10] sm:$0xff]  ;;  %v333_v22 = vld [vmem:[#allocation2] ss:$0 sm:$0xff]  ;;  %vm273_vm13 = vcmask 57344  }
  0x18   :  { %v194_v12 = vshrl.u32 %v193_v9, 7  ;;  %v93_v50 = vld [vmem:[#allocation5] sm:$0x7]  ;;  %s517_s2 = smov [#allocation11]   ;;  %s294_s21 = sshll.u32 %s588_s5, 4  ;;  %vm285_vm14 = vcmask 0   ;;  %s295_s21 = int_to_ptr.hbm [resolvable:$true] %s294_s21 }
  0x19   :  { %v251_v54 = vsub.f32 1.0, %v93_v50  ;;  %s292_s4 = sshll.u32 %s517_s2, 4  ;;  %s518_s22 = smov [#allocation12]   ;;  %s293_s4 = int_to_ptr.vmem [resolvable:$true] %s292_s4 }
  0x1a   :  { %v195_v15 = vadd.s32 8, %v194_v12  ;;  %vm197_vm5 = vcmp.eq.s32.totalorder %v194_v12, %v333_v22  ;;  %s303_s23 = sshll.u32 %s518_s22, 4  ;;  %s305_s26 = sshll.u32 %s589_s6, 4  ;;  %s304_s23 = int_to_ptr.vmem [resolvable:$true] %s303_s23  ;;  %s306_s26 = int_to_ptr.hbm [resolvable:$true] %s305_s26 }
  0x1c   :  { %vm198_vm6 = vcmp.eq.s32.totalorder %v195_v15, %v333_v22 }
  0x27   :  { %161 = vxpose.xlu0.b32.start.end [1/1] (short) (narrow) %v160_v2, 16 }
  0xbb   :  { %v144_v3 = vpop.trf.xlu0  ;;  %v111_v16 = vpop.trf.xlu1 }
  0xbc   :  { %v211_v5 = vsel %vm201_vm0, %v144_v3, -inf  ;;  %v199_v29 = vsel %vm197_vm5, %v111_v16, 0.0 }
  0xbd   :  { %v202_v32 = vsel %vm201_vm0, %v199_v29, 0.0 }
  0xc3   :  { %v145_v4 = vpop.trf.xlu0  ;;  %v112_v26 = vpop.trf.xlu1 }
  0xc4   :  { %v212_v6 = vsel %vm201_vm0, %v145_v4, -inf  ;;  %v200_v30 = vsel %vm198_vm6, %v112_v26, 0.0 }
  0xc5   :  { %v213_v7 = vmax.f32 %v211_v5, %v212_v6  ;;  %v203_v34 = vsel %vm201_vm0, %v200_v30, 0.0 }
  0xc6   :  { %v204_v37 = vadd.f32 %v203_v34, %v202_v32 }
  0xc7   :  { %v214_v8 = vrot.slane %v213_v7, 4 }
  0xc8   :  { %v205_v42 = vrot.slane %v204_v37, 4 }
  0xc9   :  { %v215_v10 = vmax.f32 %v213_v7, %v214_v8 }
  0xca   :  { %v206_v45 = vadd.f32 %v205_v42, %v204_v37 }
  0xcb   :  { %v216_v11 = vrot.slane %v215_v10, 2  ;;  %v177_v25 = vpop.trf.xlu0 }
  0xcc   :  { %v207_v48 = vrot.slane %v206_v45, 2 }
  0xcd   :  { %v217_v13 = vmax.f32 %v215_v10, %v216_v11 }
  0xce   :  { %v208_v52 = vadd.f32 %v207_v48, %v206_v45 }
  0xcf   :  { %v218_v14 = vrot.slane %v217_v13, 1 }
  0xd0   :  { %v209_v56 = vrot.slane %v208_v52, 1 }
  0xd1   :  { %v219_v17 = vmax.f32 %v217_v13, %v218_v14 }
  0xd2   :  { %v210_v59 = vadd.f32 %v209_v56, %v208_v52 }
  0xd3   :  { %vm220_vm1 = vcmp.eq.f32.partialorder %v144_v3, %v219_v17  ;;  %vm221_vm2 = vcmp.eq.f32.partialorder %v145_v4, %v219_v17  ;;  %v178_v35 = vpop.trf.xlu0 }
  0xd4   :  { %v222_v18 = vsel %vm220_vm1, %v194_v12, 16  ;;  %v223_v19 = vsel %vm221_vm2, %v195_v15, 16 }
  0xd5   :  { %v224_v20 = vsel %vm201_vm0, %v222_v18, 2147483647  ;;  %v225_v21 = vsel %vm201_vm0, %v223_v19, 2147483647 }
  0xd6   :  { %vm226_vm3 = vcmp.lt.s32.totalorder %v224_v20, %v225_v21 }
  0xd7   :  { %v227_v23 = vsel %vm226_vm3, %v224_v20, %v225_v21 }
  0xd8   :  { %v228_v24 = vrot.slane %v227_v23, 4 }
  0xda   :  { %vm229_vm4 = vcmp.lt.s32.totalorder %v227_v23, %v228_v24 }
  0xdb   :  { %v230_v27 = vsel %vm229_vm4, %v227_v23, %v228_v24 }
  0xdc   :  { %v231_v28 = vrot.slane %v230_v27, 2 }
  0xde   :  { %vm232_vm7 = vcmp.lt.s32.totalorder %v230_v27, %v231_v28 }
  0xdf   :  { %v233_v31 = vsel %vm232_vm7, %v230_v27, %v231_v28 }
  0xe0   :  { %v234_v33 = vrot.slane %v233_v31, 1 }
  0xe2   :  { %vm235_vm8 = vcmp.lt.s32.totalorder %v233_v31, %v234_v33 }
  0xe3   :  { %v236_v36 = vsel %vm235_vm8, %v233_v31, %v234_v33 }
  0xe4   :  { %vm237_vm9 = vcmp.eq.s32.totalorder %v194_v12, %v236_v36  ;;  %vm238_vm10 = vcmp.eq.s32.totalorder %v195_v15, %v236_v36 }
  0xe5   :  { %v239_v38 = vsel %vm237_vm9, %v177_v25, 0.0  ;;  %v240_v39 = vsel %vm238_vm10, %v178_v35, 0.0 }
  0xe6   :  { %v241_v40 = vsel %vm201_vm0, %v239_v38, 0.0  ;;  %v242_v41 = vsel %vm201_vm0, %v240_v39, 0.0 }
  0xe7   :  { %v243_v43 = vadd.f32 %v242_v41, %v241_v40 }
  0xe9   :  { %v244_v44 = vrot.slane %v243_v43, 4 }
  0xeb   :  { %v245_v46 = vadd.f32 %v244_v44, %v243_v43 }
  0xed   :  { %v246_v47 = vrot.slane %v245_v46, 2 }
  0xef   :  { %v247_v49 = vadd.f32 %v246_v47, %v245_v46 }
  0xf1   :  { %v248_v51 = vrot.slane %v247_v49, 1 }
  0xf3   :  { %v249_v53 = vadd.f32 %v248_v51, %v247_v49 }
  0xf5   :  { %v250_v55 = vmul.f32 0.99, %v249_v53 }
  0xf7   :  { %v252_v57 = vmul.f32 %v251_v54, %v250_v55 }
  0xf9   :  { %v254_v58 = vrot.slane %v252_v57, 7 }
  0xfb   :  { %v256_v60 = vadd.f32 %v254_v58, %v93_v50 }
  0xfd   :  { %v257_v61 = vsub.f32 %v210_v59, %v256_v60 }
  0xff   :  { %v258_v62 = vand.u32 2147483647, %v257_v61  ;;  %v260_v63 = vmul.f32 0.5, %v257_v61  ;;  %269 = vst.msk [vmem:[#allocation11 - $0x1] sm:$0x2] %vm268_vm11, %v257_v61 }
 0x100   :  { %297 = dma.vmem_to_hbm [thread:$0]  %s293_s4, 16, %s295_s21, [#allocation4]  }
 0x101   :  { %vm259_vm12 = vcmp.lt.f32.partialorder %v258_v62, 1.0  ;;  %v261_v0 = vmul.f32 %v260_v63, %v257_v61  ;;  %v322_v1 = vadd.f32 -0.5, %v258_v62 }
 0x103   :  { %v263_v2 = vsel %vm259_vm12, %v261_v0, %v322_v1 }
 0x104   :  { %v265_v3 = vrot.slane %v263_v2, 7 }
 0x106   :  { %v267_v4 = vmul.f32 %v265_v3, %v93_v50 }
 0x108   :  { %v271_v5 = vrot.slane %v267_v4, 2 }
 0x10a   :  { %v274_v6 = vsel %vm273_vm13, %v271_v5, 0.0 }
 0x10b   :  { %275 = vadd.xlane.f32.xlu1 %v274_v6 }
 0x17e   :  { %v276_v7 = vpop.xlane.xlu1 %275 }
 0x17f   :  { %v277_v8 = vrot.slane %v276_v7, 4 }
 0x181   :  { %v278_v9 = vadd.f32 %v277_v8, %v276_v7 }
 0x183   :  { %v279_v10 = vrot.slane %v278_v9, 2 }
 0x185   :  { %v280_v11 = vadd.f32 %v279_v10, %v278_v9 }
 0x187   :  { %v281_v12 = vrot.slane %v280_v11, 1 }
 0x189   :  { %v282_v13 = vadd.f32 %v281_v12, %v280_v11 }
 0x18b   :  { %323 = vpush %v282_v13 }
 0x1bc   :  { %s324_s5 = spop %323 }
 0x1bd   :  { %v284_v14 = vstv %s324_s5 }
 0x1be   :  { %286 = vst.msk [vmem:[#allocation12] sm:$0x1] %vm285_vm14, %v284_v14 }
 0x1bf   :  { %308 = dma.vmem_to_hbm [thread:$0]  %s304_s23, 16, %s306_s26, [#allocation13]  }
 0x1c0   :  { %508 = dma.done.wait [#allocation4], 16  }
 0x1c1   :  { %509 = vsyncadd [#allocation4], 4294967280 }
 0x1c2   :  { %510 = dma.done.wait [#allocation13], 16  }
 0x1c3   :  { %511 = vsyncadd [#allocation13], 4294967280 }
 0x1c4   :  { %317 = vsyncpa [#allocation3], 1 }
 0x1c5   :  { %318 = vsyncpa [#allocation6], 1 }
 0x1c6   :  { %319 = vsyncpa [#allocation9], 1 }
 0x1c7   :  { %320 = vsyncpa [#allocation4], 1 }
 0x1c8   :  { %321 = vsyncpa [#allocation13], 1 }

</bundles_post_ra>
